<compile_context>
chip_gen: v6e
topology: v6e:2x2x1
jax: 0.10.0
libtpu: 0.0.40
codegen_flags: <defaults>
</compile_context>

<pallas_src>
import functools

import jax
import jax.numpy as jnp
from jax.experimental import pallas as pl
from jax.experimental.pallas import tpu as pltpu

_EPS = 1e-12            # torch.nn.functional.normalize default eps
_EPS_SQ = _EPS * _EPS   # clamp applied to the sum of squares


def _cdiv(a, b):
    return -(-a // b)


def _round_up(x, m):
    return _cdiv(x, m) * m


def _plan(B, D, itemsize):
    """Pick (block_b, vmem_limit_bytes) from the batch/feature size and the
    per-generation VMEM capacity."""
    cap = 64 * 1024 * 1024  # conservative default == v7x per-core VMEM
    try:
        cap = int(pltpu.get_tpu_info().vmem_capacity_bytes)
    except Exception:
        pass
    # Total-footprint budget: <= ~48 MiB and <= 3/4 of physical VMEM
    # (safe on v7x 64 MiB; lots of headroom on v5e/v6e 128 MiB).
    budget = min(48 * 1024 * 1024, (cap * 3) // 4)

    # Sublane packing: 8 rows for 4-byte, 16 for bf16, 32 for 1-byte dtypes.
    row_mult = max(8, 32 // itemsize)

    # Per tile row: 3 inputs x 2 pipeline buffers in the input dtype, plus the
    # in-kernel f32 working set (3 upcast copies + ~2 transient products).
    bytes_per_row = D * (3 * 2 * itemsize + 5 * 4)

    bb = min(1024, budget // max(bytes_per_row, 1), _round_up(B, row_mult))
    bb = max(row_mult, (bb // row_mult) * row_mult)

    # v7x has 2 TensorCores and the parallel batch axis is what feeds the
    # second one: once the batch is big enough that splitting is free, make
    # sure there are at least two tiles.
    if B >= 4 * row_mult and _cdiv(B, bb) < 2:
        bb = max(row_mult, (_cdiv(B, 2) // row_mult) * row_mult)

    footprint = bb * bytes_per_row + 2 * 128 * 4 + (1 << 20)  # + margin
    vmem_limit = max(footprint, 16 * 1024 * 1024) + 8 * 1024 * 1024
    vmem_limit = min(vmem_limit, (cap * 9) // 10)
    return bb, int(vmem_limit)


def _triplet_kernel(a_ref, p_ref, n_ref, out_ref, *, alpha, batch, block_b,
                    normalize):
    f32 = jnp.float32
    a = a_ref[...].astype(f32)
    p = p_ref[...].astype(f32)
    n = n_ref[...].astype(f32)

    # Per-row reductions (block_b, 1); the only (block_b, D) live values are
    # the three loaded tiles and one transient product at a time.
    ss_a = jnp.sum(a * a, axis=-1, keepdims=True)
    ss_p = jnp.sum(p * p, axis=-1, keepdims=True)
    ss_n = jnp.sum(n * n, axis=-1, keepdims=True)
    dot_ap = jnp.sum(a * p, axis=-1, keepdims=True)
    dot_an = jnp.sum(a * n, axis=-1, keepdims=True)

    if normalize:
        inv_a = jax.lax.rsqrt(jnp.maximum(ss_a, _EPS_SQ))  # EUP, ~free
        inv_p = jax.lax.rsqrt(jnp.maximum(ss_p, _EPS_SQ))
        inv_n = jax.lax.rsqrt(jnp.maximum(ss_n, _EPS_SQ))
        qa = ss_a * (inv_a * inv_a)
        qp = ss_p * (inv_p * inv_p)
        qn = ss_n * (inv_n * inv_n)
        dap2 = qa + qp - 2.0 * dot_ap * (inv_a * inv_p)
        dan2 = qa + qn - 2.0 * dot_an * (inv_a * inv_n)
    else:
        dap2 = ss_a + ss_p - 2.0 * dot_ap
        dan2 = ss_a + ss_n - 2.0 * dot_an

    # Clamp before sqrt: rounding can push the squared distance slightly
    # negative for near-identical vectors.
    d_ap = jnp.sqrt(jnp.maximum(dap2, 0.0))
    d_an = jnp.sqrt(jnp.maximum(dan2, 0.0))

    loss = jnp.maximum(d_ap + alpha - d_an, 0.0)  # (block_b, 1)

    # Mask rows of the (possibly partial) last tile that are past the batch:
    # their inputs are unspecified (can be anything, incl. NaN), so select,
    # don't multiply.
    row = (pl.program_id(0) * block_b
           + jax.lax.broadcasted_iota(jnp.int32, (block_b, 1), 0))
    loss = jnp.where(row < batch, loss, 0.0)

    # Lane-dense per-tile partial sum (scalar splat across 128 lanes).
    out_ref[...] = jnp.full(out_ref.shape, jnp.sum(loss), dtype=out_ref.dtype)


def triplet_loss(anchor, positive, negative, *, alpha=1.0, reduction="mean",
                 normalize=True, block_b=None):
    """Pallas TPU TripletLoss. Inputs: (B, D) float arrays. Returns scalar f32."""
    B, D = anchor.shape
    assert positive.shape == (B, D) and negative.shape == (B, D)

    itemsize = jnp.dtype(anchor.dtype).itemsize
    auto_bb, vmem_limit = _plan(B, D, itemsize)
    if block_b is None:
        block_b = auto_bb
    else:
        row_mult = max(8, 32 // itemsize)
        block_b = max(row_mult, (int(block_b) // row_mult) * row_mult)

    num_tiles = _cdiv(B, block_b)

    kernel = functools.partial(_triplet_kernel, alpha=float(alpha), batch=B,
                               block_b=block_b, normalize=bool(normalize))
    row_spec = pl.BlockSpec((block_b, D), lambda i: (i, 0))

    partials = pl.pallas_call(
        kernel,
        out_shape=jax.ShapeDtypeStruct((num_tiles, 1, 128), jnp.float32),
        grid_spec=pltpu.PrefetchScalarGridSpec(
            num_scalar_prefetch=0,
            grid=(num_tiles,),
            in_specs=[row_spec, row_spec, row_spec],
            out_specs=pl.BlockSpec((1, 1, 128), lambda i: (i, 0, 0)),
        ),
        compiler_params=pltpu.CompilerParams(
            dimension_semantics=("parallel",),
            vmem_limit_bytes=vmem_limit),
    )(anchor, positive, negative)

    total = jnp.sum(partials[:, 0, 0])
    if reduction == "mean":
        return total * jnp.float32(1.0 / B)
    elif reduction == "sum":
        return total
    else:
        # TODO(synk): the torch module also accepts an arbitrary callable as
        # `reduction` (applied to the per-row hinge losses); only the fused
        # 'mean' / 'sum' paths are implemented here.
        raise NotImplementedError("reduction must be 'mean' or 'sum'")


def _reference_triplet_loss(anchor, positive, negative, alpha=1.0,
                            reduction="mean"):
    def l2n(x):
        x = x.astype(jnp.float32)
        nrm = jnp.linalg.norm(x, axis=-1, keepdims=True)
        return x / jnp.maximum(nrm, _EPS)

    a, p, n = l2n(anchor), l2n(positive), l2n(negative)
    d_ap = jnp.linalg.norm(a - p, axis=-1)
    d_an = jnp.linalg.norm(a - n, axis=-1)
    hinge = jnp.maximum(d_ap + alpha - d_an, 0.0)
    return jnp.mean(hinge) if reduction == "mean" else jnp.sum(hinge)


if __name__ == "__main__":
    key = jax.random.PRNGKey(0)
    k1, k2, k3, k4, k5, k6 = jax.random.split(key, 6)

    # Case 1: f32, mean reduction, single tile.
    B, D = 16, 128
    anchor = jax.random.normal(k1, (B, D), dtype=jnp.float32)
    positive = jax.random.normal(k2, (B, D), dtype=jnp.float32)
    negative = jax.random.normal(k3, (B, D), dtype=jnp.float32)
    loss = jax.block_until_ready(
        triplet_loss(anchor, positive, negative, alpha=1.0, reduction="mean"))
    ref = _reference_triplet_loss(anchor, positive, negative, alpha=1.0,
                                  reduction="mean")
    assert jnp.allclose(loss, ref, atol=1e-4, rtol=1e-4), (loss, ref)

    # Case 2: ragged batch (partial last tile, masked rows), sum reduction,
    # bf16 inputs streamed as bf16.
    B2, D2 = 13, 96
    a2 = jax.random.normal(k4, (B2, D2), dtype=jnp.bfloat16)
    p2 = jax.random.normal(k5, (B2, D2), dtype=jnp.bfloat16)
    n2 = jax.random.normal(k6, (B2, D2), dtype=jnp.bfloat16)
    loss2 = jax.block_until_ready(
        triplet_loss(a2, p2, n2, alpha=0.5, reduction="sum"))
    ref2 = _reference_triplet_loss(a2, p2, n2, alpha=0.5, reduction="sum")
    assert jnp.allclose(loss2, ref2, atol=2e-2, rtol=2e-2), (loss2, ref2)

    # Case 3: multi-tile parallel grid with a partial last tile (forced small
    # block_b exercises the masking + per-tile partial-sum path).
    B3, D3 = 40, 128
    a3 = jax.random.normal(k1, (B3, D3), dtype=jnp.float32)
    p3 = jax.random.normal(k2, (B3, D3), dtype=jnp.float32)
    n3 = jax.random.normal(k3, (B3, D3), dtype=jnp.float32)
    loss3 = jax.block_until_ready(
        triplet_loss(a3, p3, n3, alpha=1.0, reduction="mean", block_b=16))
    ref3 = _reference_triplet_loss(a3, p3, n3, alpha=1.0, reduction="mean")
    assert jnp.allclose(loss3, ref3, atol=1e-4, rtol=1e-4), (loss3, ref3)

    print("KERNEL_OK")
</pallas_src>

<mosaic_0001>
module attributes {stable_mosaic.version = 11 : i64} {
  func.func @_triplet_kernel(%arg0: i32, %arg1: memref<16x128xf32, #tpu.memory_space<vmem>>, %arg2: memref<16x128xf32, #tpu.memory_space<vmem>>, %arg3: memref<16x128xf32, #tpu.memory_space<vmem>>, %arg4: memref<1x1x128xf32, #tpu.memory_space<vmem>>) attributes {dimension_semantics = [#tpu.dimension_semantics<parallel>], iteration_bounds = array<i64: 1>, scalar_prefetch = 0 : i64, scratch_operands = 0 : i64, tpu.core_type = #tpu.core_type<tc>, window_params = [{transform_indices = @transform_0, window_bounds = array<i64: 16, 128>}, {transform_indices = @transform_1, window_bounds = array<i64: 16, 128>}, {transform_indices = @transform_2, window_bounds = array<i64: 16, 128>}, {transform_indices = @transform_3, window_bounds = array<i64: 1, 1, 128>}]} {
    %c0 = arith.constant 0 : index
    %c0_0 = arith.constant 0 : index
    %0 = vector.load %arg1[%c0, %c0_0] : memref<16x128xf32, #tpu.memory_space<vmem>>, vector<16x128xf32>
    %c0_1 = arith.constant 0 : index
    %c0_2 = arith.constant 0 : index
    %1 = vector.load %arg2[%c0_1, %c0_2] : memref<16x128xf32, #tpu.memory_space<vmem>>, vector<16x128xf32>
    %c0_3 = arith.constant 0 : index
    %c0_4 = arith.constant 0 : index
    %2 = vector.load %arg3[%c0_3, %c0_4] : memref<16x128xf32, #tpu.memory_space<vmem>>, vector<16x128xf32>
    %3 = arith.mulf %0, %0 : vector<16x128xf32>
    %cst = arith.constant dense<0.000000e+00> : vector<16xf32>
    %4 = vector.multi_reduction <add>, %3, %cst [1] : vector<16x128xf32> to vector<16xf32>
    %5 = vector.shape_cast %4 : vector<16xf32> to vector<16x1xf32>
    %6 = arith.mulf %1, %1 : vector<16x128xf32>
    %cst_5 = arith.constant dense<0.000000e+00> : vector<16xf32>
    %7 = vector.multi_reduction <add>, %6, %cst_5 [1] : vector<16x128xf32> to vector<16xf32>
    %8 = vector.shape_cast %7 : vector<16xf32> to vector<16x1xf32>
    %9 = arith.mulf %2, %2 : vector<16x128xf32>
    %cst_6 = arith.constant dense<0.000000e+00> : vector<16xf32>
    %10 = vector.multi_reduction <add>, %9, %cst_6 [1] : vector<16x128xf32> to vector<16xf32>
    %11 = vector.shape_cast %10 : vector<16xf32> to vector<16x1xf32>
    %12 = arith.mulf %0, %1 : vector<16x128xf32>
    %cst_7 = arith.constant dense<0.000000e+00> : vector<16xf32>
    %13 = vector.multi_reduction <add>, %12, %cst_7 [1] : vector<16x128xf32> to vector<16xf32>
    %14 = vector.shape_cast %13 : vector<16xf32> to vector<16x1xf32>
    %15 = arith.mulf %0, %2 : vector<16x128xf32>
    %cst_8 = arith.constant dense<0.000000e+00> : vector<16xf32>
    %16 = vector.multi_reduction <add>, %15, %cst_8 [1] : vector<16x128xf32> to vector<16xf32>
    %17 = vector.shape_cast %16 : vector<16xf32> to vector<16x1xf32>
    %cst_9 = arith.constant 1.000000e-24 : f32
    %18 = vector.broadcast %cst_9 : f32 to vector<16x1xf32>
    %19 = arith.maximumf %5, %18 : vector<16x1xf32>
    %20 = math.rsqrt %19 : vector<16x1xf32>
    %cst_10 = arith.constant 1.000000e-24 : f32
    %21 = vector.broadcast %cst_10 : f32 to vector<16x1xf32>
    %22 = arith.maximumf %8, %21 : vector<16x1xf32>
    %23 = math.rsqrt %22 : vector<16x1xf32>
    %cst_11 = arith.constant 1.000000e-24 : f32
    %24 = vector.broadcast %cst_11 : f32 to vector<16x1xf32>
    %25 = arith.maximumf %11, %24 : vector<16x1xf32>
    %26 = math.rsqrt %25 : vector<16x1xf32>
    %27 = arith.mulf %20, %20 : vector<16x1xf32>
    %28 = arith.mulf %5, %27 : vector<16x1xf32>
    %29 = arith.mulf %23, %23 : vector<16x1xf32>
    %30 = arith.mulf %8, %29 : vector<16x1xf32>
    %31 = arith.mulf %26, %26 : vector<16x1xf32>
    %32 = arith.mulf %11, %31 : vector<16x1xf32>
    %33 = arith.addf %28, %30 : vector<16x1xf32>
    %cst_12 = arith.constant 2.000000e+00 : f32
    %34 = vector.broadcast %cst_12 : f32 to vector<16x1xf32>
    %35 = arith.mulf %34, %14 : vector<16x1xf32>
    %36 = arith.mulf %20, %23 : vector<16x1xf32>
    %37 = arith.mulf %35, %36 : vector<16x1xf32>
    %38 = arith.subf %33, %37 : vector<16x1xf32>
    %39 = arith.addf %28, %32 : vector<16x1xf32>
    %cst_13 = arith.constant 2.000000e+00 : f32
    %40 = vector.broadcast %cst_13 : f32 to vector<16x1xf32>
    %41 = arith.mulf %40, %17 : vector<16x1xf32>
    %42 = arith.mulf %20, %26 : vector<16x1xf32>
    %43 = arith.mulf %41, %42 : vector<16x1xf32>
    %44 = arith.subf %39, %43 : vector<16x1xf32>
    %cst_14 = arith.constant 0.000000e+00 : f32
    %45 = vector.broadcast %cst_14 : f32 to vector<16x1xf32>
    %46 = arith.maximumf %38, %45 : vector<16x1xf32>
    %47 = math.sqrt %46 : vector<16x1xf32>
    %cst_15 = arith.constant 0.000000e+00 : f32
    %48 = vector.broadcast %cst_15 : f32 to vector<16x1xf32>
    %49 = arith.maximumf %44, %48 : vector<16x1xf32>
    %50 = math.sqrt %49 : vector<16x1xf32>
    %cst_16 = arith.constant 1.000000e+00 : f32
    %51 = vector.broadcast %cst_16 : f32 to vector<16x1xf32>
    %52 = arith.addf %47, %51 : vector<16x1xf32>
    %53 = arith.subf %52, %50 : vector<16x1xf32>
    %cst_17 = arith.constant 0.000000e+00 : f32
    %54 = vector.broadcast %cst_17 : f32 to vector<16x1xf32>
    %55 = arith.maximumf %53, %54 : vector<16x1xf32>
    %c16_i32 = arith.constant 16 : i32
    %56 = arith.muli %arg0, %c16_i32 : i32
    %57 = tpu.iota {dimensions = array<i32: 0>} : vector<16x1xi32>
    %58 = vector.broadcast %56 : i32 to vector<16x1xi32>
    %59 = arith.addi %58, %57 : vector<16x1xi32>
    %c16_i32_18 = arith.constant 16 : i32
    %60 = vector.broadcast %c16_i32_18 : i32 to vector<16x1xi32>
    %61 = arith.cmpi slt, %59, %60 : vector<16x1xi32>
    %cst_19 = arith.constant 0.000000e+00 : f32
    %62 = vector.broadcast %cst_19 : f32 to vector<16x1xf32>
    %63 = arith.select %61, %55, %62 : vector<16x1xi1>, vector<16x1xf32>
    %64 = vector.shape_cast %63 : vector<16x1xf32> to vector<1x16x1xf32>
    %cst_20 = arith.constant dense<0.000000e+00> : vector<1xf32>
    %65 = vector.multi_reduction <add>, %64, %cst_20 [1, 2] : vector<1x16x1xf32> to vector<1xf32>
    %66 = vector.shape_cast %65 : vector<1xf32> to vector<1x1x1xf32>
    %67 = vector.extract %66[0, 0, 0] : f32 from vector<1x1x1xf32>
    %68 = vector.broadcast %67 : f32 to vector<1x1x128xf32>
    %c0_21 = arith.constant 0 : index
    %c0_22 = arith.constant 0 : index
    %c0_23 = arith.constant 0 : index
    %69 = vector.load %arg4[%c0_21, %c0_22, %c0_23] : memref<1x1x128xf32, #tpu.memory_space<vmem>>, vector<1x1x128xf32>
    tpu.vector_store %arg4[%c0_21, %c0_22, %c0_23], %68 {strides = array<i32>} : memref<1x1x128xf32, #tpu.memory_space<vmem>>, vector<1x1x128xf32>,
    return
  }
  func.func @transform_0(%arg0: i32) -> (i32, i32) {
    %c0_i32 = arith.constant 0 : i32
    %c0_i32_0 = arith.constant 0 : i32
    return %arg0, %c0_i32 : i32, i32
  }
  func.func @transform_1(%arg0: i32) -> (i32, i32) {
    %c0_i32 = arith.constant 0 : i32
    %c0_i32_0 = arith.constant 0 : i32
    return %arg0, %c0_i32 : i32, i32
  }
  func.func @transform_2(%arg0: i32) -> (i32, i32) {
    %c0_i32 = arith.constant 0 : i32
    %c0_i32_0 = arith.constant 0 : i32
    return %arg0, %c0_i32 : i32, i32
  }
  func.func @transform_3(%arg0: i32) -> (i32, i32, i32) {
    %c0_i32 = arith.constant 0 : i32
    %c0_i32_0 = arith.constant 0 : i32
    %c0_i32_1 = arith.constant 0 : i32
    return %arg0, %c0_i32, %c0_i32_0 : i32, i32, i32
  }
}

</mosaic_0001>

<bundles_post_ra>
// kernel: tpu_custom_call.1
= control target key start
LH: loop header
LB: loop body
LE: loop exit
PB: predicated region body
PF: predicated region fallthrough
CT: control target
= control target key end

     0   :  { %8 = vsyncpa [#allocation3], 0  ;;  %s368_s0 = inlined_call_operand.hbm [shape: f32[16,128], index: 0, kind: input, shape index: {}]   ;;  %s369_s1 = inlined_call_operand.hbm [shape: f32[16,128], index: 1, kind: input, shape index: {}]   ;;  %s370_s2 = inlined_call_operand.hbm [shape: f32[16,128], index: 2, kind: input, shape index: {}]   ;;  %s371_s3 = inlined_call_operand.hbm [shape: f32[1,1,128], index: 3, kind: output, shape index: {}]  }
   0x1   :  { %9 = vsyncpa [#allocation6], 0 }
   0x2   :  { %10 = vsyncpa [#allocation4], 0  ;;  %s330_s12 = smov [#allocation5]   ;;  %s331_s14 = smov [#allocation2]  }
   0x3   :  { %s28_s13 = sshll.u32 %s330_s12, 4  ;;  %s16_s15 = sshll.u32 %s331_s14, 4  ;;  %s29_s13 = int_to_ptr.vmem [resolvable:$true] %s28_s13  ;;  %s17_s15 = int_to_ptr.vmem [resolvable:$true] %s16_s15 }
   0x4   :  { %s252_s16 = scalar_lea.vmem %s29_s13, 256  ;;  %p257_p1 = scmp.lt.s32.totalorder %s29_s13, %s29_s13 }
   0x5   :  { %p253_p0 = scmp.ne.s32.totalorder %s29_s13, %s252_s16  ;;  %p258_p2 = scmp.lt.s32.totalorder %s252_s16, %s252_s16 }
   0x7   :  { %p259_p3 = por %p258_p2, %p257_p1 }
   0x9   :  { %p260_p4 = pnand %p259_p3, %p253_p0 }
   0xb   :  { %263 = shalt.err (!%p260_p4)
}
   0xc   :  { %s332_s17 = smov 128   ;;  %s333_s18 = smov 8  }
   0xd   :  { %34 = dma.hbm_to_vmem [thread:$0]  %s369_s1, 256, %s29_s13, [#allocation6], %s332_s17, %s332_s17, %s333_s18  }
   0xe   :  { %s272_s21 = scalar_lea.vmem %s17_s15, 256  ;;  %p277_p6 = scmp.lt.s32.totalorder %s17_s15, %s17_s15 }
   0xf   :  { %p273_p5 = scmp.ne.s32.totalorder %s17_s15, %s272_s21  ;;  %p278_p7 = scmp.lt.s32.totalorder %s272_s21, %s272_s21 }
  0x11   :  { %p279_p8 = por %p278_p7, %p277_p6 }
  0x13   :  { %p280_p9 = pnand %p279_p8, %p273_p5 }
  0x15   :  { %283 = shalt.err (!%p280_p9)
}
  0x16   :  { %22 = dma.hbm_to_vmem [thread:$0]  %s368_s0, 256, %s17_s15, [#allocation3], %s332_s17, %s332_s17, %s333_s18  }
  0x17   :  { %s334_s24 = smov [#allocation7]  }
  0x18   :  { %s40_s25 = sshll.u32 %s334_s24, 4  ;;  %s41_s25 = int_to_ptr.vmem [resolvable:$true] %s40_s25 }
  0x19   :  { %s292_s26 = scalar_lea.vmem %s41_s25, 256  ;;  %p297_p11 = scmp.lt.s32.totalorder %s41_s25, %s41_s25 }
  0x1a   :  { %p293_p10 = scmp.ne.s32.totalorder %s41_s25, %s292_s26  ;;  %p298_p12 = scmp.lt.s32.totalorder %s292_s26, %s292_s26 }
  0x1c   :  { %p299_p13 = por %p298_p12, %p297_p11 }
  0x1e   :  { %p300_p0 = pnand %p299_p13, %p293_p10 }
  0x20   :  { %303 = shalt.err (!%p300_p0)
}
  0x21   :  { %46 = dma.hbm_to_vmem [thread:$0]  %s370_s2, 256, %s41_s25, [#allocation6], %s332_s17, %s332_s17, %s333_s18  }
  0x22   :  { %324 = dma.done.wait [#allocation3], 256  }
  0x23   :  { %325 = vsyncadd [#allocation3], 4294967040 }
  0x24   :  { %326 = dma.done.wait [#allocation6], 512  }
  0x25   :  { %327 = vsyncadd [#allocation6], 4294966784  ;;  %v58_v0 = vld [vmem:[#allocation5] sm:$0xff]  ;;  %v56_v1 = vld [vmem:[#allocation2] sm:$0xff]  ;;  %vm185_vm8 = vcmask 7168   ;;  %s335_s0 = smov [#allocation8]  }
  0x26   :  { %v59_v2 = vld [vmem:[#allocation5 + $0x8] sm:$0xff]  ;;  %v68_v3 = vmul.f32 %v58_v0, %v58_v0  ;;  %v62_v4 = vmul.f32 %v56_v1, %v56_v1  ;;  %v57_v5 = vld [vmem:[#allocation2 + $0x8] sm:$0xff]  ;;  %v60_v9 = vld [vmem:[#allocation7] sm:$0xff]  ;;  %v80_v12 = vmul.f32 %v58_v0, %v56_v1  ;;  %s206_s2 = sshll.u32 %s335_s0, 4  ;;  %s207_s2 = int_to_ptr.vmem [resolvable:$true] %s206_s2 }
  0x27   :  { %v69_v6 = vmul.f32 %v59_v2, %v59_v2  ;;  %v63_v7 = vmul.f32 %v57_v5, %v57_v5  ;;  %v61_v8 = vld [vmem:[#allocation7 + $0x8] sm:$0xff]  ;;  %v74_v11 = vmul.f32 %v60_v9, %v60_v9  ;;  %v81_v13 = vmul.f32 %v59_v2, %v57_v5  ;;  %s304_s29 = scalar_lea.vmem %s207_s2, 16  ;;  %s308_s30 = scalar_lea.vmem %s207_s2, 32 }
  0x28   :  { %70 = vadd.xlane.f32.xlu1 %v68_v3  ;;  %64 = vadd.xlane.f32.xlu0 %v62_v4  ;;  %v75_v10 = vmul.f32 %v61_v8, %v61_v8  ;;  %v87_v14 = vmul.f32 %v61_v8, %v57_v5  ;;  %v86_v15 = vmul.f32 %v60_v9, %v56_v1  ;;  %p305_p1 = scmp.ne.s32.totalorder %s207_s2, %s304_s29  ;;  %p309_p2 = scmp.lt.s32.totalorder %s207_s2, %s207_s2 }
  0x29   :  { %p310_p3 = scmp.lt.s32.totalorder %s308_s30, %s304_s29 }
  0x2b   :  { %p311_p4 = por %p310_p3, %p309_p2 }
  0x2c   :  { %72 = vadd.xlane.f32.xlu1 %v69_v6  ;;  %66 = vadd.xlane.f32.xlu0 %v63_v7 }
  0x2d   :  { %p312_p5 = pnand %p311_p4, %p305_p1 }
  0x30   :  { %78 = vadd.xlane.f32.xlu1 %v75_v10  ;;  %76 = vadd.xlane.f32.xlu0 %v74_v11 }
  0x34   :  { %82 = vadd.xlane.f32.xlu0 %v80_v12  ;;  %84 = vadd.xlane.f32.xlu1 %v81_v13 }
  0x38   :  { %90 = vadd.xlane.f32.xlu1 %v87_v14  ;;  %88 = vadd.xlane.f32.xlu0 %v86_v15 }
  0xb1   :  { %v71_v16 = vpop.xlane.xlu1 %70  ;;  %v65_v17 = vpop.xlane.xlu0 %64 }
  0xb2   :  { %v96_v18 = vmax.f32 %v71_v16, 1e-24  ;;  %v92_v19 = vmax.f32 %v65_v17, 1e-24 }
  0xb4   :  { %224 = vrsqrt.f32 %v96_v18 }
  0xb5   :  { %226 = vrsqrt.f32 %v92_v19  ;;  %v73_v20 = vpop.xlane.xlu1 %72  ;;  %v67_v21 = vpop.xlane.xlu0 %66 }
  0xb6   :  { %v97_v22 = vmax.f32 %v73_v20, 1e-24  ;;  %v93_v23 = vmax.f32 %v67_v21, 1e-24 }
  0xb8   :  { %228 = vrsqrt.f32 %v97_v22 }
  0xb9   :  { %230 = vrsqrt.f32 %v93_v23  ;;  %v79_v24 = vpop.xlane.xlu1 %78  ;;  %v77_v25 = vpop.xlane.xlu0 %76 }
  0xba   :  { %v101_v26 = vmax.f32 %v79_v24, 1e-24  ;;  %v100_v27 = vmax.f32 %v77_v25, 1e-24 }
  0xbc   :  { %232 = vrsqrt.f32 %v101_v26 }
  0xbd   :  { %234 = vrsqrt.f32 %v100_v27  ;;  %v83_v28 = vpop.xlane.xlu0 %82  ;;  %v85_v29 = vpop.xlane.xlu1 %84 }
  0xbe   :  { %v118_v35 = vmul.f32 2.0, %v83_v28  ;;  %v119_v41 = vmul.f32 2.0, %v85_v29 }
  0xc1   :  { %v225_v30 = vpop.eup %224  ;;  %v91_v42 = vpop.xlane.xlu1 %90 }
  0xc2   :  { %v227_v31 = vpop.eup %226  ;;  %v108_v32 = vmul.f32 %v225_v30, %v225_v30  ;;  %v89_v47 = vpop.xlane.xlu0 %88  ;;  %v129_v52 = vmul.f32 2.0, %v91_v42 }
  0xc3   :  { %v104_v33 = vmul.f32 %v227_v31, %v227_v31  ;;  %v120_v34 = vmul.f32 %v227_v31, %v225_v30  ;;  %v128_v57 = vmul.f32 2.0, %v89_v47 }
  0xc4   :  { %v110_v36 = vmul.f32 %v108_v32, %v71_v16 }
  0xc5   :  { %v229_v37 = vpop.eup %228  ;;  %v106_v38 = vmul.f32 %v104_v33, %v65_v17  ;;  %v122_v45 = vmul.f32 %v120_v34, %v118_v35 }
  0xc6   :  { %v231_v39 = vpop.eup %230  ;;  %v109_v40 = vmul.f32 %v229_v37, %v229_v37 }
  0xc7   :  { %v116_v43 = vadd.f32 %v110_v36, %v106_v38  ;;  %v105_v44 = vmul.f32 %v231_v39, %v231_v39  ;;  %v121_v46 = vmul.f32 %v231_v39, %v229_v37 }
  0xc8   :  { %v111_v48 = vmul.f32 %v109_v40, %v73_v20 }
  0xc9   :  { %v233_v49 = vpop.eup %232  ;;  %v107_v50 = vmul.f32 %v105_v44, %v67_v21  ;;  %v124_v51 = vsub.f32 %v116_v43, %v122_v45  ;;  %v123_v55 = vmul.f32 %v121_v46, %v119_v41 }
  0xca   :  { %v235_v53 = vpop.eup %234  ;;  %v113_v54 = vmul.f32 %v233_v49, %v233_v49  ;;  %v131_v56 = vmul.f32 %v233_v49, %v231_v39 }
  0xcb   :  { %v117_v58 = vadd.f32 %v111_v48, %v107_v50  ;;  %v112_v59 = vmul.f32 %v235_v53, %v235_v53  ;;  %v136_v60 = vmax.f32 %v124_v51, 0.0  ;;  %v130_v61 = vmul.f32 %v235_v53, %v227_v31 }
  0xcc   :  { %v115_v62 = vmul.f32 %v113_v54, %v79_v24  ;;  %v133_v2 = vmul.f32 %v131_v56, %v129_v52 }
  0xcd   :  { %v114_v63 = vmul.f32 %v112_v59, %v77_v25  ;;  %236 = vrsqrt.f32 %v136_v60  ;;  %v125_v0 = vsub.f32 %v117_v58, %v123_v55  ;;  %v132_v5 = vmul.f32 %v130_v61, %v128_v57 }
  0xce   :  { %v127_v1 = vadd.f32 %v115_v62, %v107_v50  ;;  %vm140_vm0 = vcmp.eq.f32.partialorder %v136_v60, inf  ;;  %v143_v15 = vand.u32 2147483648, %v136_v60  ;;  %vm142_vm2 = vcmp.eq.f32.partialorder %v136_v60, 0.0 }
  0xcf   :  { %v126_v3 = vadd.f32 %v114_v63, %v106_v38  ;;  %v137_v4 = vmax.f32 %v125_v0, 0.0 }
  0xd0   :  { %v135_v6 = vsub.f32 %v127_v1, %v133_v2 }
  0xd1   :  { %238 = vrsqrt.f32 %v137_v4  ;;  %v134_v7 = vsub.f32 %v126_v3, %v132_v5  ;;  %vm147_vm1 = vcmp.eq.f32.partialorder %v137_v4, inf  ;;  %v150_v16 = vand.u32 2147483648, %v137_v4 }
  0xd2   :  { %v153_v8 = vmax.f32 %v135_v6, 0.0  ;;  %vm149_vm3 = vcmp.eq.f32.partialorder %v137_v4, 0.0 }
  0xd3   :  { %v152_v9 = vmax.f32 %v134_v7, 0.0 }
  0xd4   :  { %240 = vrsqrt.f32 %v153_v8  ;;  %vm163_vm4 = vcmp.eq.f32.partialorder %v153_v8, inf  ;;  %vm165_vm5 = vcmp.eq.f32.partialorder %v153_v8, 0.0  ;;  %v166_v24 = vand.u32 2147483648, %v153_v8 }
  0xd5   :  { %242 = vrsqrt.f32 %v152_v9  ;;  %vm156_vm6 = vcmp.eq.f32.partialorder %v152_v9, inf  ;;  %v159_v25 = vand.u32 2147483648, %v152_v9  ;;  %vm158_vm7 = vcmp.eq.f32.partialorder %v152_v9, 0.0 }
  0xda   :  { %v237_v10 = vpop.eup %236 }
  0xdb   :  { %v139_v11 = vmul.f32 %v237_v10, %v136_v60 }
  0xdd   :  { %v141_v13 = vsel %vm140_vm0, %v136_v60, %v139_v11 }
  0xde   :  { %v239_v12 = vpop.eup %238  ;;  %v144_v20 = vsel %vm142_vm2, %v143_v15, %v141_v13 }
  0xdf   :  { %v146_v14 = vmul.f32 %v239_v12, %v137_v4  ;;  %v168_v30 = vadd.f32 1.0, %v144_v20 }
  0xe1   :  { %v241_v17 = vpop.eup %240  ;;  %v148_v18 = vsel %vm147_vm1, %v137_v4, %v146_v14 }
  0xe2   :  { %v243_v19 = vpop.eup %242  ;;  %v151_v21 = vsel %vm149_vm3, %v150_v16, %v148_v18  ;;  %v162_v22 = vmul.f32 %v241_v17, %v153_v8 }
  0xe3   :  { %v155_v23 = vmul.f32 %v243_v19, %v152_v9  ;;  %v169_v27 = vadd.f32 1.0, %v151_v21 }
  0xe4   :  { %v164_v26 = vsel %vm163_vm4, %v153_v8, %v162_v22 }
  0xe5   :  { %v157_v28 = vsel %vm156_vm6, %v152_v9, %v155_v23  ;;  %v167_v29 = vsel %vm165_vm5, %v166_v24, %v164_v26 }
  0xe6   :  { %v160_v31 = vsel %vm158_vm7, %v159_v25, %v157_v28  ;;  %v171_v32 = vsub.f32 %v169_v27, %v167_v29 }
  0xe7   :  { %v170_v33 = vsub.f32 %v168_v30, %v160_v31 }
  0xe8   :  { %v173_v34 = vmax.f32 %v171_v32, 0.0 }
  0xe9   :  { %v172_v35 = vmax.f32 %v170_v33, 0.0 }
  0xea   :  { %v187_v36 = vsel %vm185_vm8, %v173_v34, 0.0 }
  0xeb   :  { %v186_v37 = vsel %vm185_vm8, %v172_v35, 0.0 }
  0xec   :  { %v188_v38 = vadd.f32 %v187_v36, %v186_v37 }
  0xee   :  { %189 = vadd.xlane.f32.xlu0 %v188_v38 }
 0x177   :  { %v190_v39 = vpop.xlane.xlu0 %189 }
 0x178   :  { %v191_v40 = vrot.slane %v190_v39, 4 }
 0x17a   :  { %v192_v41 = vadd.f32 %v191_v40, %v190_v39 }
 0x17c   :  { %v193_v42 = vrot.slane %v192_v41, 2 }
 0x17e   :  { %v194_v43 = vadd.f32 %v193_v42, %v192_v41 }
 0x180   :  { %v195_v44 = vrot.slane %v194_v43, 1 }
 0x182   :  { %v196_v45 = vadd.f32 %v195_v44, %v194_v43 }
 0x184   :  { %216 = vpush %v196_v45 }
 0x1b5   :  { %s217_s28 = spop %216 }
 0x1b6   :  { %v198_v46 = vstv %s217_s28 }
 0x1b7   :  { %199 = vst [vmem:[#allocation8] sm:$0x1] %v198_v46 }
 0x1b8   :  { %315 = shalt.err (!%p312_p5)
}
 0x1b9   :  { %209 = dma.vmem_to_hbm [thread:$0]  %s207_s2, 16, %s371_s3, [#allocation4]  }
 0x1ba   :  { %328 = dma.done.wait [#allocation4], 16  }
 0x1bb   :  { %329 = vsyncadd [#allocation4], 4294967280 }
 0x1bc   :  { %213 = vsyncpa [#allocation3], 1 }
 0x1bd   :  { %214 = vsyncpa [#allocation6], 1 }
 0x1be   :  { %215 = vsyncpa [#allocation4], 1 }

</bundles_post_ra>
